<compile_context>
chip_gen: v6e
topology: v6e:2x2x1
jax: 0.10.0
libtpu: 0.0.40
codegen_flags: <defaults>
</compile_context>

<pallas_src>
import jax
import jax.numpy as jnp
from jax.experimental import pallas as pl
from jax.experimental.pallas import tpu as pltpu


def _round_up(n, m):
    return ((n + m - 1) // m) * m


def dqn_kernel(x_ref,
               w1_ref, b1_ref,
               w2_ref, b2_ref,
               w3_ref, b3_ref,
               w4_ref, b4_ref,
               o_ref):
    # Feature-major: h is (features, batch_tile) with batch on the 128 lanes.
    # MXU operands are bf16; accumulation, bias-add and ReLU are f32.
    h = x_ref[...]                                               # (S, tile_b) bf16
    for w_ref, b_ref in ((w1_ref, b1_ref), (w2_ref, b2_ref), (w3_ref, b3_ref)):
        z = jnp.dot(w_ref[...], h, preferred_element_type=jnp.float32) + b_ref[...]
        h = jnp.maximum(z, 0.0).astype(jnp.bfloat16)             # repack for next MXU op
    out = jnp.dot(w4_ref[...], h, preferred_element_type=jnp.float32) + b4_ref[...]
    o_ref[...] = out.astype(o_ref.dtype)                         # (A_pad, tile_b) store


def pack_params(params):
    """One-time weight prep (transpose to feature-major, bf16 cast, pad the
    action layer to 8 sublanes).  Call once and reuse across forward calls."""
    S, H = params["w1"].shape
    A = params["w4"].shape[1]
    A_pad = _round_up(max(A, 8), 8)
    w4t = jnp.zeros((A_pad, H), jnp.bfloat16).at[:A].set(
        params["w4"].T.astype(jnp.bfloat16))
    b4 = jnp.zeros((A_pad, 1), jnp.float32).at[:A].set(
        params["b4"].reshape(-1, 1).astype(jnp.float32))
    consts = (
        params["w1"].T.astype(jnp.bfloat16),                 # (H, S)
        params["b1"].reshape(-1, 1).astype(jnp.float32),     # (H, 1)
        params["w2"].T.astype(jnp.bfloat16),                 # (H, H)
        params["b2"].reshape(-1, 1).astype(jnp.float32),
        params["w3"].T.astype(jnp.bfloat16),                 # (H, H)
        params["b3"].reshape(-1, 1).astype(jnp.float32),
        w4t,                                                  # (A_pad, H)
        b4,                                                   # (A_pad, 1)
    )
    return {"consts": consts, "action_size": A, "action_pad": A_pad,
            "state_size": S, "hidden_size": H}


def _pick_tile_b(B, block_b):
    """Lane-dim batch tile: the full B when B <= 128, otherwise a multiple of 128
    capped at block_b and sized so B > 128 yields >= 2 grid steps (v7x dual-TC)."""
    if B <= 128:
        return B
    block_b = max(128, (block_b // 128) * 128)
    return max(128, min(block_b, _round_up(pl.cdiv(B, 2), 128)))


def deep_dqn_forward(x, packed, *, block_b=1024):
    """x: (B, state_size). packed: output of pack_params. Returns (B, action_size) f32."""
    B, S = x.shape
    assert S == packed["state_size"]
    A = packed["action_size"]
    A_pad = packed["action_pad"]
    H = packed["hidden_size"]
    consts = packed["consts"]

    tile_b = _pick_tile_b(B, block_b)
    grid = (pl.cdiv(B, tile_b),)

    # Only per-call prep: activations to feature-major bf16 (B*S*2 bytes).
    x_t = x.astype(jnp.bfloat16).T                               # (S, B)

    # Weights/biases: full-array blocks with constant index_map -> fetched once,
    # VMEM-resident for every batch tile.
    const_spec = lambda a: pl.BlockSpec(a.shape, lambda i: (0, 0))
    x_spec = pl.BlockSpec((S, tile_b), lambda i: (0, i))
    out_spec = pl.BlockSpec((A_pad, tile_b), lambda i: (0, i))

    const_bytes = sum(int(a.size) * a.dtype.itemsize for a in consts)
    flops = 2 * B * (S * H + 2 * H * H + H * A_pad)
    bytes_accessed = B * S * 2 + const_bytes + A_pad * B * 4

    # VMEM budget: double-buffered resident weights + double-buffered x/out tiles
    # + a few f32 intermediate activation slabs, with 4x headroom (4 MiB floor).
    vmem_limit = int(max(
        4 * 1024 * 1024,
        4 * (2 * const_bytes
             + 2 * tile_b * S * 2
             + 2 * tile_b * A_pad * 4
             + 4 * tile_b * H * 4)))

    out = pl.pallas_call(
        dqn_kernel,
        out_shape=jax.ShapeDtypeStruct((A_pad, B), jnp.float32),
        grid=grid,
        in_specs=[x_spec] + [const_spec(a) for a in consts],
        out_specs=out_spec,
        compiler_params=pltpu.CompilerParams(
            dimension_semantics=("parallel",),
            vmem_limit_bytes=vmem_limit),
        cost_estimate=pl.CostEstimate(
            flops=flops, transcendentals=0, bytes_accessed=bytes_accessed),
    )(x_t, *consts)

    return out[:A].T                                             # (B, A) f32


def ref_forward(x, params):
    """Plain-JAX reference with identical bf16-input / f32-accumulate numerics."""
    h = x.astype(jnp.bfloat16)
    for i in (1, 2, 3):
        z = jnp.dot(h, params[f"w{i}"].astype(jnp.bfloat16),
                    preferred_element_type=jnp.float32) + params[f"b{i}"]
        h = jnp.maximum(z, 0.0).astype(jnp.bfloat16)
    return jnp.dot(h, params["w4"].astype(jnp.bfloat16),
                   preferred_element_type=jnp.float32) + params["b4"]


def init_params(key, state_size, action_size, hidden_size):
    """Deterministic init mimicking nn.Linear's U(-1/sqrt(fan_in), 1/sqrt(fan_in))."""
    dims = [(state_size, hidden_size),
            (hidden_size, hidden_size),
            (hidden_size, hidden_size),
            (hidden_size, action_size)]
    params = {}
    for i, (fan_in, fan_out) in enumerate(dims, start=1):
        key, kw, kb = jax.random.split(key, 3)
        bound = 1.0 / (fan_in ** 0.5)
        params[f"w{i}"] = jax.random.uniform(
            kw, (fan_in, fan_out), jnp.float32, minval=-bound, maxval=bound)
        params[f"b{i}"] = jax.random.uniform(
            kb, (1, fan_out), jnp.float32, minval=-bound, maxval=bound)
    return params


if __name__ == "__main__":
    state_size, action_size, hidden_size = 8, 4, 32

    key = jax.random.PRNGKey(0)
    key, kx = jax.random.split(key)
    params = init_params(key, state_size, action_size, hidden_size)
    packed = pack_params(params)   # one-time prep, reused for every forward call

    # batch=256: multi-tile "parallel" grid (2 x 128 lanes) for v7x's two TCs.
    # batch=300: ragged last tile (grid=2, only 44 valid lanes in the final block).
    # batch=10 : single sub-128 full-width tile.
    for batch in (256, 300, 10):
        kx, sub = jax.random.split(kx)
        x = jax.random.normal(sub, (batch, state_size), jnp.float32)

        out = jax.block_until_ready(deep_dqn_forward(x, packed))
        ref = ref_forward(x, params)

        assert out.shape == (batch, action_size)
        assert jnp.allclose(out, ref, atol=1e-3, rtol=1e-3), \
            float(jnp.max(jnp.abs(out - ref)))

    print("KERNEL_OK")
</pallas_src>

<mosaic_0001>
module attributes {stable_mosaic.version = 11 : i64} {
  func.func @dqn_kernel(%arg0: i32, %arg1: memref<8x128xbf16, #tpu.memory_space<vmem>>, %arg2: memref<32x8xbf16, #tpu.memory_space<vmem>>, %arg3: memref<32x1xf32, #tpu.memory_space<vmem>>, %arg4: memref<32x32xbf16, #tpu.memory_space<vmem>>, %arg5: memref<32x1xf32, #tpu.memory_space<vmem>>, %arg6: memref<32x32xbf16, #tpu.memory_space<vmem>>, %arg7: memref<32x1xf32, #tpu.memory_space<vmem>>, %arg8: memref<8x32xbf16, #tpu.memory_space<vmem>>, %arg9: memref<8x1xf32, #tpu.memory_space<vmem>>, %arg10: memref<8x128xf32, #tpu.memory_space<vmem>>) attributes {dimension_semantics = [#tpu.dimension_semantics<parallel>], iteration_bounds = array<i64: 2>, scalar_prefetch = 0 : i64, scratch_operands = 0 : i64, tpu.core_type = #tpu.core_type<tc>, window_params = [{transform_indices = @transform_0, window_bounds = array<i64: 8, 128>}, {pipeline_mode = #tpu.pipeline_mode<synchronous>, transform_indices = @transform_1, window_bounds = array<i64: 32, 8>}, {pipeline_mode = #tpu.pipeline_mode<synchronous>, transform_indices = @transform_2, window_bounds = array<i64: 32, 1>}, {pipeline_mode = #tpu.pipeline_mode<synchronous>, transform_indices = @transform_3, window_bounds = array<i64: 32, 32>}, {pipeline_mode = #tpu.pipeline_mode<synchronous>, transform_indices = @transform_4, window_bounds = array<i64: 32, 1>}, {pipeline_mode = #tpu.pipeline_mode<synchronous>, transform_indices = @transform_5, window_bounds = array<i64: 32, 32>}, {pipeline_mode = #tpu.pipeline_mode<synchronous>, transform_indices = @transform_6, window_bounds = array<i64: 32, 1>}, {pipeline_mode = #tpu.pipeline_mode<synchronous>, transform_indices = @transform_7, window_bounds = array<i64: 8, 32>}, {pipeline_mode = #tpu.pipeline_mode<synchronous>, transform_indices = @transform_8, window_bounds = array<i64: 8, 1>}, {transform_indices = @transform_9, window_bounds = array<i64: 8, 128>}]} {
    %c0 = arith.constant 0 : index
    %c0_0 = arith.constant 0 : index
    %0 = vector.load %arg1[%c0, %c0_0] : memref<8x128xbf16, #tpu.memory_space<vmem>>, vector<8x128xbf16>
    %c0_1 = arith.constant 0 : index
    %c0_2 = arith.constant 0 : index
    %1 = vector.load %arg2[%c0_1, %c0_2] : memref<32x8xbf16, #tpu.memory_space<vmem>>, vector<32x8xbf16>
    %cst = arith.constant dense<0.000000e+00> : vector<32x128xf32>
    %2 = tpu.matmul %1, %0, %cst {dimension_numbers = #tpu.dot_dimension_numbers<[1], [0], [0], [1], [0, 0, 1, 1], [], []>} : vector<32x8xbf16>, vector<8x128xbf16>, vector<32x128xf32> -> vector<32x128xf32>
    %c0_3 = arith.constant 0 : index
    %c0_4 = arith.constant 0 : index
    %3 = vector.load %arg3[%c0_3, %c0_4] : memref<32x1xf32, #tpu.memory_space<vmem>>, vector<32x1xf32>
    %4 = vector.broadcast %3 : vector<32x1xf32> to vector<32x128xf32>
    %5 = arith.addf %2, %4 : vector<32x128xf32>
    %cst_5 = arith.constant 0.000000e+00 : f32
    %6 = vector.broadcast %cst_5 : f32 to vector<32x128xf32>
    %7 = arith.maximumf %5, %6 : vector<32x128xf32>
    %8 = arith.truncf %7 : vector<32x128xf32> to vector<32x128xbf16>
    %c0_6 = arith.constant 0 : index
    %c0_7 = arith.constant 0 : index
    %9 = vector.load %arg4[%c0_6, %c0_7] : memref<32x32xbf16, #tpu.memory_space<vmem>>, vector<32x32xbf16>
    %cst_8 = arith.constant dense<0.000000e+00> : vector<32x128xf32>
    %10 = tpu.matmul %9, %8, %cst_8 {dimension_numbers = #tpu.dot_dimension_numbers<[1], [0], [0], [1], [0, 0, 1, 1], [], []>} : vector<32x32xbf16>, vector<32x128xbf16>, vector<32x128xf32> -> vector<32x128xf32>
    %c0_9 = arith.constant 0 : index
    %c0_10 = arith.constant 0 : index
    %11 = vector.load %arg5[%c0_9, %c0_10] : memref<32x1xf32, #tpu.memory_space<vmem>>, vector<32x1xf32>
    %12 = vector.broadcast %11 : vector<32x1xf32> to vector<32x128xf32>
    %13 = arith.addf %10, %12 : vector<32x128xf32>
    %cst_11 = arith.constant 0.000000e+00 : f32
    %14 = vector.broadcast %cst_11 : f32 to vector<32x128xf32>
    %15 = arith.maximumf %13, %14 : vector<32x128xf32>
    %16 = arith.truncf %15 : vector<32x128xf32> to vector<32x128xbf16>
    %c0_12 = arith.constant 0 : index
    %c0_13 = arith.constant 0 : index
    %17 = vector.load %arg6[%c0_12, %c0_13] : memref<32x32xbf16, #tpu.memory_space<vmem>>, vector<32x32xbf16>
    %cst_14 = arith.constant dense<0.000000e+00> : vector<32x128xf32>
    %18 = tpu.matmul %17, %16, %cst_14 {dimension_numbers = #tpu.dot_dimension_numbers<[1], [0], [0], [1], [0, 0, 1, 1], [], []>} : vector<32x32xbf16>, vector<32x128xbf16>, vector<32x128xf32> -> vector<32x128xf32>
    %c0_15 = arith.constant 0 : index
    %c0_16 = arith.constant 0 : index
    %19 = vector.load %arg7[%c0_15, %c0_16] : memref<32x1xf32, #tpu.memory_space<vmem>>, vector<32x1xf32>
    %20 = vector.broadcast %19 : vector<32x1xf32> to vector<32x128xf32>
    %21 = arith.addf %18, %20 : vector<32x128xf32>
    %cst_17 = arith.constant 0.000000e+00 : f32
    %22 = vector.broadcast %cst_17 : f32 to vector<32x128xf32>
    %23 = arith.maximumf %21, %22 : vector<32x128xf32>
    %24 = arith.truncf %23 : vector<32x128xf32> to vector<32x128xbf16>
    %c0_18 = arith.constant 0 : index
    %c0_19 = arith.constant 0 : index
    %25 = vector.load %arg8[%c0_18, %c0_19] : memref<8x32xbf16, #tpu.memory_space<vmem>>, vector<8x32xbf16>
    %cst_20 = arith.constant dense<0.000000e+00> : vector<8x128xf32>
    %26 = tpu.matmul %25, %24, %cst_20 {dimension_numbers = #tpu.dot_dimension_numbers<[1], [0], [0], [1], [0, 0, 1, 1], [], []>} : vector<8x32xbf16>, vector<32x128xbf16>, vector<8x128xf32> -> vector<8x128xf32>
    %c0_21 = arith.constant 0 : index
    %c0_22 = arith.constant 0 : index
    %27 = vector.load %arg9[%c0_21, %c0_22] : memref<8x1xf32, #tpu.memory_space<vmem>>, vector<8x1xf32>
    %28 = vector.broadcast %27 : vector<8x1xf32> to vector<8x128xf32>
    %29 = arith.addf %26, %28 : vector<8x128xf32>
    %c0_23 = arith.constant 0 : index
    %c0_24 = arith.constant 0 : index
    %30 = vector.load %arg10[%c0_23, %c0_24] : memref<8x128xf32, #tpu.memory_space<vmem>>, vector<8x128xf32>
    tpu.vector_store %arg10[%c0_23, %c0_24], %29 {strides = array<i32>} : memref<8x128xf32, #tpu.memory_space<vmem>>, vector<8x128xf32>,
    return
  }
  func.func @transform_0(%arg0: i32) -> (i32, i32) {
    %c0_i32 = arith.constant 0 : i32
    %c0_i32_0 = arith.constant 0 : i32
    return %c0_i32, %arg0 : i32, i32
  }
  func.func @transform_1(%arg0: i32) -> (i32, i32) {
    %c0_i32 = arith.constant 0 : i32
    %c0_i32_0 = arith.constant 0 : i32
    %c0_i32_1 = arith.constant 0 : i32
    return %c0_i32, %c0_i32_0 : i32, i32
  }
  func.func @transform_2(%arg0: i32) -> (i32, i32) {
    %c0_i32 = arith.constant 0 : i32
    %c0_i32_0 = arith.constant 0 : i32
    %c0_i32_1 = arith.constant 0 : i32
    return %c0_i32, %c0_i32_0 : i32, i32
  }
  func.func @transform_3(%arg0: i32) -> (i32, i32) {
    %c0_i32 = arith.constant 0 : i32
    %c0_i32_0 = arith.constant 0 : i32
    %c0_i32_1 = arith.constant 0 : i32
    return %c0_i32, %c0_i32_0 : i32, i32
  }
  func.func @transform_4(%arg0: i32) -> (i32, i32) {
    %c0_i32 = arith.constant 0 : i32
    %c0_i32_0 = arith.constant 0 : i32
    %c0_i32_1 = arith.constant 0 : i32
    return %c0_i32, %c0_i32_0 : i32, i32
  }
  func.func @transform_5(%arg0: i32) -> (i32, i32) {
    %c0_i32 = arith.constant 0 : i32
    %c0_i32_0 = arith.constant 0 : i32
    %c0_i32_1 = arith.constant 0 : i32
    return %c0_i32, %c0_i32_0 : i32, i32
  }
  func.func @transform_6(%arg0: i32) -> (i32, i32) {
    %c0_i32 = arith.constant 0 : i32
    %c0_i32_0 = arith.constant 0 : i32
    %c0_i32_1 = arith.constant 0 : i32
    return %c0_i32, %c0_i32_0 : i32, i32
  }
  func.func @transform_7(%arg0: i32) -> (i32, i32) {
    %c0_i32 = arith.constant 0 : i32
    %c0_i32_0 = arith.constant 0 : i32
    %c0_i32_1 = arith.constant 0 : i32
    return %c0_i32, %c0_i32_0 : i32, i32
  }
  func.func @transform_8(%arg0: i32) -> (i32, i32) {
    %c0_i32 = arith.constant 0 : i32
    %c0_i32_0 = arith.constant 0 : i32
    %c0_i32_1 = arith.constant 0 : i32
    return %c0_i32, %c0_i32_0 : i32, i32
  }
  func.func @transform_9(%arg0: i32) -> (i32, i32) {
    %c0_i32 = arith.constant 0 : i32
    %c0_i32_0 = arith.constant 0 : i32
    return %c0_i32, %arg0 : i32, i32
  }
}

</mosaic_0001>

<bundles_post_ra>
// kernel: tpu_custom_call.1
= control target key start
LH: loop header
LB: loop body
LE: loop exit
PB: predicated region body
PF: predicated region fallthrough
CT: control target
= control target key end

     0   :  { %14 = vsyncpa [#allocation3], 0  ;;  %s1157_s0 = inlined_call_operand.vmem [shape: bf16[8,256], index: 0, kind: input, shape index: {}]   ;;  %s1158_s1 = inlined_call_operand.vmem [shape: bf16[32,8], index: 1, kind: input, shape index: {}]   ;;  %s1159_s2 = inlined_call_operand.vmem [shape: f32[32,1], index: 2, kind: input, shape index: {}]   ;;  %s1160_s3 = inlined_call_operand.vmem [shape: bf16[32,32], index: 3, kind: input, shape index: {}]   ;;  %s1161_s4 = inlined_call_operand.vmem [shape: f32[32,1], index: 4, kind: input, shape index: {}]   ;;  %s1162_s5 = inlined_call_operand.vmem [shape: bf16[32,32], index: 5, kind: input, shape index: {}]   ;;  %s1163_s6 = inlined_call_operand.vmem [shape: f32[32,1], index: 6, kind: input, shape index: {}]   ;;  %s1164_s7 = inlined_call_operand.vmem [shape: bf16[8,32], index: 7, kind: input, shape index: {}]   ;;  %s1165_s8 = inlined_call_operand.vmem [shape: f32[8,1], index: 8, kind: input, shape index: {}]   ;;  %s1166_s9 = inlined_call_operand.hbm [shape: f32[8,256], index: 9, kind: output, shape index: {}]  }
   0x1   :  { %16 = vsyncpa [#allocation3 + $0x1], 0  ;;  %s991_s30 = smov 0   ;;  %s993_s10 = smov 0  }
   0x2   :  { %s995_s11 = smov 0   ;;  %s997_s12 = smov 0  }
   0x3 LB: > { %s1012_s13 = sadd.s32 4294967295, %s935_s12   ;;  %s757_s14 = sadd.s32 4294967294, %s935_s12   ;;  %s935_s12 = sphi %s997_s12, %s1172_s12   ;;  %s931_s11 = sphi %s995_s11, %s1171_s11   ;;  %s927_s10 = sphi %s993_s10, %s1170_s10   ;;  %s923_s30 = sphi %s991_s30, %s1169_s30  }
   0x4   : > { %s1016_s15 = sadd.s32 1, %s935_s12   ;;  %s223_s16 = sadd.s32 1, %s931_s11 }
   0x5   : > { %s220_s17 = ssub.s32 %s935_s12, %s1016_s15  ;;  %p233_p0 = scmp.ne.s32.totalorder %s931_s11, %s927_s10 }
   0x6   : > { %p221_p1 = scmp.eq.s32.totalorder %s220_s17, 0  ;;  %p234_p2 = scmp.eq.s32.totalorder %s1012_s13, 1 }
   0x7   : > { %p239_p3 = scmp.ne.s32.totalorder %s927_s10, %s923_s30  ;;  %p240_p4 = scmp.eq.s32.totalorder %s757_s14, 1 }
   0x8   : > { %s1027_s18 = scalar_select %p221_p1, %s931_s11, %s223_s16  }
   0x9   : > { %p1029_p5 = por %p234_p2, %p233_p0  ;;  %p1033_p6 = por %p240_p4, %p239_p3 }
   0xa   : > { %p760_p7 = scmp.ge.s32.totalorder %s935_s12, 1  ;;  %p289_p8 = scmp.lt.s32.totalorder %s935_s12, 3 }
   0xc   : > { %p290_p9 = pnand %p760_p7, %p289_p8 }
   0xd   : > { %p324_p10 = scmp.lt.s32.totalorder (!%p290_p9), %s1012_s13, 1  ;;  %s321_s14 = sand.u32 (!%p290_p9), 1, %s927_s10  }
   0xe   : > { %293 = sbr.rel (%p290_p9) target bundleno = 869 (0x365), region = 56  ;;  %s777_s17 = sshll.u32 (!%p290_p9), %s1012_s13, 7 }
   0xf   : > { %s1116_s26 = scalar_lea.hbm (!%p290_p9), %s1166_s9, %s777_s17  ;;  %s940_s27 = smov (!%p290_p9), [#allocation2]  }
  0x13   : > { %v869_v0 = vld [vmem:[%s1158_s1] sm:$0xff]   ;;  %vm368_vm0 = vcmask 64512   ;;  %s325_s23 = scalar_select %p324_p10, %s1012_s13, 1  ;;  %v336_v1 = vld [vmem:[%s1159_s2 + $0x10] sm:$0xff]  ;;  %v937_v2 = vmov 0   ;;  %vm375_vm1 = vcmask 1043456  }
  0x14   : > { %796 = vmatprep.mubr.msk.bf16.mxu0 %vm368_vm0, %v869_v0  ;;  %867 = vset.pattern.permute.xlu0 %v937_v2  ;;  %v334_v3 = vld [vmem:[%s1159_s2] sm:$0xff]  ;;  %v337_v4 = vld [vmem:[%s1159_s2 + $0x18] sm:$0xff]  ;;  %v870_v6 = vld [vmem:[%s1158_s1 + $0x8] sm:$0xff]   ;;  %vm472_vm2 = vcmask 261120   ;;  %v938_v58 = vmov 0.0   ;;  %vm939_vm3 = vmmov 0  }
  0x15   : > { %s762_s28 = sshll.u32 %s325_s23, 2  ;;  %350 = vperm.xlu0 %867, %v336_v1   ;;  %868 = vset.pattern.permute.xlu1 %v937_v2  ;;  %v335_v7 = vld [vmem:[%s1159_s2 + $0x8] sm:$0xff]  ;;  %v440_v9 = vld [vmem:[%s1161_s4 + $0x10] sm:$0xff]  ;;  %v441_v10 = vld [vmem:[%s1161_s4 + $0x18] sm:$0xff]  ;;  %s685_s23 = scalar_lea.sflag [#allocation3], %s321_s14 }
  0x16   : > { %s327_s16 = scalar_lea.vmem %s1157_s0, %s762_s28  ;;  %340 = vperm.xlu1 %868, %v334_v3   ;;  %v438_v11 = vld [vmem:[%s1161_s4] sm:$0xff]  ;;  %v439_v12 = vld [vmem:[%s1161_s4 + $0x8] sm:$0xff]  ;;  %v540_v13 = vld [vmem:[%s1163_s6 + $0x10] sm:$0xff]  ;;  %s879_s28 = sshll.u32 %s940_s27, 4  ;;  %s880_s28 = int_to_ptr.vmem [resolvable:$false] %s879_s28 }
  0x17   : > { %v329_v5 = vld [vmem:[%s327_s16] sm:$0xf]  ;;  %v541_v14 = vld [vmem:[%s1163_s6 + $0x18] sm:$0xff]  ;;  %v539_v16 = vld [vmem:[%s1163_s6 + $0x8] sm:$0xff]  ;;  %s761_s16 = sshll.u32 %s321_s14, 3  ;;  %s881_s29 = scalar_lea.vmem %s880_s28, 256 }
  0x18   : > { %824 = vmatprep.subr.msk.bf16.mxu0 %vm375_vm1, %v329_v5  ;;  %v377_v8 = vsel %vm375_vm1, %v329_v5, 0  ;;  %v538_v15 = vld [vmem:[%s1163_s6] sm:$0xff]  ;;  %v872_v37 = vld [vmem:[%s1160_s3 + $0x8] sm:$0xff]   ;;  %s323_s21 = scalar_lea.vmem [#allocation2], %s761_s16 }
  0x19   : > { %795 = vmatpush3.bf16.msra.mxu0 %v377_v8  ;;  %355 = vperm.xlu0 %867, %v337_v4   ;;  %v634_v17 = vld [vmem:[%s1165_s8] sm:$0xff]  ;;  %v874_v57 = vld [vmem:[%s1162_s5 + $0x8] sm:$0xff]   ;;  %s698_s22 = sshll.u32 %s323_s21, 4  ;;  %s1118_s22 = int_to_ptr.vmem [resolvable:$true] %s698_s22 }
  0x1a   : > { %345 = vperm.xlu1 %868, %v335_v7   ;;  %v871_v18 = vld [vmem:[%s1160_s3] sm:$0xff]   ;;  %s875_s13 = scalar_lea.vmem %s1118_s22, 128  ;;  %p882_p0 = scmp.lt.s32.totalorder %s1118_s22, %s880_s28 }
  0x1b   : > { %804 = vmatprep.mubr.msk.bf16.mxu1 %vm472_vm2, %v871_v18  ;;  %v873_v38 = vld [vmem:[%s1162_s5] sm:$0xff]   ;;  %p876_p11 = scmp.ne.s32.totalorder %s1118_s22, %s875_s13  ;;  %p883_p1 = scmp.lt.s32.totalorder %s881_s29, %s875_s13 }
  0x1c   : > { %797 = vmatmul.mubr.msk.bf16.vlgmr.msra.gmra.mxu0 %vm368_vm0, %v870_v6 }
  0x1d   : > { %454 = vperm.xlu0 %867, %v440_v9   ;;  %812 = vmatprep.mubr.msk.bf16.mxu0 %vm472_vm2, %v873_v38  ;;  %p877_p12 = pnand %p876_p11, %p1029_p5  ;;  %p884_p2 = por %p883_p1, %p882_p0 }
  0x1e   : > { %459 = vperm.xlu1 %868, %v441_v10  }
  0x1f   : > { %p878_p13 = pneg %p877_p12 }
  0x21   : > { %444 = vperm.xlu0 %867, %v438_v11   ;;  %p885_p3 = pnand %p884_p2, %p878_p13 }
  0x22   : > { %449 = vperm.xlu1 %868, %v439_v12  }
  0x25   : > { %554 = vperm.xlu0 %867, %v540_v13   ;;  %v633_v13 = vld [vmem:[%s1164_s7] sm:$0xf] }
  0x26   : > { %559 = vperm.xlu1 %868, %v541_v14  }
  0x29   : > { %544 = vperm.xlu0 %867, %v538_v15  }
  0x2a   : > { %549 = vperm.xlu1 %868, %v539_v16  }
  0x2d   : > { %637 = vperm.xlu0 %867, %v634_v17  }
  0x90   : > { %v351_v19 = vpop.permute.xlu0 %350 }
  0x91   : > { %v341_v20 = vpop.permute.xlu1 %340 }
  0x94   : > { %v356_v24 = vpop.permute.xlu0 %355 }
  0x95   : > { %v346_v28 = vpop.permute.xlu1 %345 }
  0x98   : > { %v455_v39 = vpop.permute.xlu0 %454 }
  0x99   : > { %v460_v40 = vpop.permute.xlu1 %459 }
  0x9c   : > { %v445_v44 = vpop.permute.xlu0 %444 }
  0x9d   : > { %v450_v48 = vpop.permute.xlu1 %449 }
  0xa0   : > { %v555_v59 = vpop.permute.xlu0 %554 }
  0xa1   : > { %v560_v60 = vpop.permute.xlu1 %559 }
  0xa4   : > { %v545_v1 = vpop.permute.xlu0 %544 }
  0xa5   : > { %v550_v3 = vpop.permute.xlu1 %549 }
  0xa8   : > { %v638_v14 = vpop.permute.xlu0 %637 }
  0xdc   : > { %v798_v21 = vpop.f32.mrf.mxu0 }
  0xdd   : > { %v422_v23 = vadd.f32 %v798_v21, %v351_v19 }
  0xde   : > { %v413_v22 = vpop.f32.mrf.mxu0 }
  0xdf   : > { %v414_v26 = vadd.f32 %v413_v22, %v341_v20  ;;  %v430_v30 = vmax.f32 %v422_v23, 0.0 }
  0xe0   : > { %v799_v25 = vpop.f32.mrf.mxu0 }
  0xe1   : > { %v425_v27 = vadd.f32 %v799_v25, %v356_v24  ;;  %v428_v33 = vmax.f32 %v414_v26, 0.0 }
  0xe2   : > { %v416_v29 = vpop.f32.mrf.mxu0 }
  0xe3   : > { %v431_v31 = vmax.f32 %v425_v27, 0.0  ;;  %v417_v32 = vadd.f32 %v416_v29, %v346_v28 }
  0xe5   : > { %v429_v34 = vmax.f32 %v417_v32, 0.0  ;;  %v433_v35 = vpack.c.bf16 %v431_v31, %v430_v30 }
  0xe7   : > { %v432_v36 = vpack.c.bf16 %v429_v34, %v428_v33  ;;  %800 = vmatprep.subr.bf16.mxu1 %v433_v35 }
  0xe8   : > { %801 = vmatpush3.bf16.msra.mxu1 %v433_v35 }
  0xe9   : > { %802 = vmatprep.subr.bf16.mxu1 %v432_v36 }
  0xec   : > { %803 = vmatpush3.bf16.msra.mxu1 %v432_v36 }
  0xed   : > { %816 = vmatprep.subr.bf16.mxu1 %v938_v58 }
  0xef   : > { %805 = vmatmul.mubr.msk.bf16.vlgmr.msra.gmra.mxu1 %vm472_vm2, %v872_v37 }
  0xf0   : > { %820 = vmatprep.mubr.msk.bf16.mxu1 %vm939_vm3, %v938_v58 }
 0x1af   : > { %v806_v41 = vpop.f32.mrf.mxu1 }
 0x1b0   : > { %v522_v43 = vadd.f32 %v806_v41, %v455_v39 }
 0x1b1   : > { %v513_v42 = vpop.f32.mrf.mxu1 }
 0x1b2   : > { %v514_v46 = vadd.f32 %v513_v42, %v445_v44  ;;  %v530_v50 = vmax.f32 %v522_v43, 0.0 }
 0x1b3   : > { %v807_v45 = vpop.f32.mrf.mxu1 }
 0x1b4   : > { %v525_v47 = vadd.f32 %v807_v45, %v460_v40  ;;  %v528_v53 = vmax.f32 %v514_v46, 0.0 }
 0x1b5   : > { %v516_v49 = vpop.f32.mrf.mxu1 }
 0x1b6   : > { %v531_v51 = vmax.f32 %v525_v47, 0.0  ;;  %v517_v52 = vadd.f32 %v516_v49, %v450_v48 }
 0x1b8   : > { %v533_v54 = vpack.c.bf16 %v531_v51, %v530_v50  ;;  %v529_v55 = vmax.f32 %v517_v52, 0.0 }
 0x1ba   : > { %v532_v56 = vpack.c.bf16 %v529_v55, %v528_v53  ;;  %808 = vmatprep.subr.bf16.mxu0 %v533_v54 }
 0x1bb   : > { %809 = vmatpush3.bf16.msra.mxu0 %v533_v54 }
 0x1bc   : > { %810 = vmatprep.subr.bf16.mxu0 %v532_v56 }
 0x1bf   : > { %811 = vmatpush3.bf16.msra.mxu0 %v532_v56 }
 0x1c2   : > { %813 = vmatmul.mubr.msk.bf16.vlgmr.msra.gmra.mxu0 %vm472_vm2, %v874_v57 }
 0x282   : > { %v814_v61 = vpop.f32.mrf.mxu0 }
 0x283   : > { %v621_v63 = vadd.f32 %v814_v61, %v555_v59 }
 0x284   : > { %v612_v62 = vpop.f32.mrf.mxu0 }
 0x285   : > { %v629_v5 = vmax.f32 %v621_v63, 0.0  ;;  %v613_v6 = vadd.f32 %v612_v62, %v545_v1 }
 0x286   : > { %v815_v0 = vpop.f32.mrf.mxu0 }
 0x287   : > { %v624_v2 = vadd.f32 %v815_v0, %v560_v60  ;;  %v627_v11 = vmax.f32 %v613_v6, 0.0 }
 0x288   : > { %v615_v4 = vpop.f32.mrf.mxu0 }
 0x289   : > { %v630_v7 = vmax.f32 %v624_v2, 0.0  ;;  %v616_v8 = vadd.f32 %v615_v4, %v550_v3 }
 0x28b   : > { %v632_v9 = vpack.c.bf16 %v630_v7, %v629_v5  ;;  %v628_v10 = vmax.f32 %v616_v8, 0.0 }
 0x28d   : > { %817 = vmatpush3.bf16.msra.mxu1 %v632_v9  ;;  %v631_v12 = vpack.c.bf16 %v628_v10, %v627_v11 }
 0x28e   : > { %818 = vmatprep.subr.bf16.mxu1 %v938_v58 }
 0x291   : > { %819 = vmatpush3.bf16.msra.mxu1 %v631_v12 }
 0x294   : > { %821 = vmatmul.mubr.msk.bf16.vlgmr.msra.gmra.mxu1 %vm472_vm2, %v633_v13 }
 0x354   : > { %v677_v15 = vpop.f32.mrf.mxu1 }
 0x355   : > { %v678_v16 = vadd.f32 %v677_v15, %v638_v14 }
 0x356   : > { %v822_v17 = vpop.f32.mrf.mxu1 }
 0x357   : > { %683 = vst [vmem:[%s323_s21] sm:$0xff] %v678_v16 }
 0x358   : > { %v680_v18 = vpop.f32.mrf.mxu1 }
 0x359   : > { %888 = shalt.err (!%p885_p3)
}
 0x35a   : > { %s889_s16 = scalar_lea.hbm %s1116_s26, 128  ;;  %s893_s21 = scalar_lea.hbm %s1166_s9, 256 }
 0x35b   : > { %p890_p4 = scmp.ne.s32.totalorder %s1116_s26, %s889_s16  ;;  %p894_p9 = scmp.lt.s32.totalorder %s1116_s26, %s1166_s9 }
 0x35c   : > { %p895_p10 = scmp.lt.s32.totalorder %s893_s21, %s889_s16 }
 0x35d   : > { %p891_p7 = pnand %p890_p4, %p1029_p5 }
 0x35e   : > { %p896_p11 = por %p895_p10, %p894_p9 }
 0x35f   : > { %p892_p8 = pneg %p891_p7 }
 0x361   : > { %p897_p12 = pnand %p896_p11, %p892_p8 }
 0x363   : > { %900 = shalt.err (!%p897_p12)
}
 0x364   : > { %825 = dma.vmem_to_hbm [thread:$0]  (%p1029_p5), %s1118_s22, 128, %s1116_s26, %s685_s23   ;;  %v823_v19 = vpop.f32.mrf.mxu1 }
 0x365 PF: > { %p831_p13 = scmp.ge.s32.totalorder %s935_s12, 2  ;;  %s710_s13 = sand.u32 1, %s923_s30  }
 0x366   : > { %s711_s27 = scalar_lea.sflag [#allocation3], %s710_s13 }
 0x367   : > { %p828_p0 = pnand %p831_p13, %p1033_p6 }
 0x369   : > { %p829_p1 = pneg %p828_p0 }
 0x36b   : > { %918 = dma.done.wait (%p829_p1), %s711_s27, 128  }
 0x36c   : > { %920 = vsyncadd (%p829_p1), %s711_s27, 4294967168  ;;  %p19_p2 = scmp.ge.s32.totalorder %s1016_s15, 4   ;;  %s1169_s30 = smov %s927_s10 }
 0x36d   : > { %s1170_s10 = smov %s931_s11  ;;  %s1171_s11 = smov %s1027_s18 }
 0x36e   : > { %s1172_s12 = smov %s1016_s15  ;;  %21 = sbr.rel (!%p19_p2) target bundleno = 3 (0x3), region = 91 }
 0x373   :  { %716 = vsyncpa [#allocation3], 1 }
 0x374   :  { %718 = vsyncpa [#allocation3 + $0x1], 1 }

</bundles_post_ra>
